<compile_context>
chip_gen: v7x
topology: tpu7x:2x2x1
jax: 0.10.0
libtpu: 0.0.40
codegen_flags: <defaults>
</compile_context>

<pallas_src>
import math

import jax
import jax.numpy as jnp
from jax.experimental import pallas as pl
from jax.experimental.pallas import tpu as pltpu

_LANE = 128
_SUBLANE = 8
_FAST_PATH_MACS = 1 << 22  # below this many MACs, plain XLA beats pallas_call overhead


def _round_up(x, m):
    return ((x + m - 1) // m) * m


def _vmem_budget_and_limit():
    """Generation-aware VMEM sizing (v5e/v6e: 128 MiB, v7x: 64 MiB per TC)."""
    cap = None
    try:
        cap = int(getattr(pltpu.get_tpu_info(), "vmem_capacity_bytes", 0)) or None
    except Exception:
        cap = None
    if cap is None:
        cap = 64 << 20  # conservative (v7x-sized) default
    limit = max(32 << 20, cap - (16 << 20))  # headroom for Mosaic internal scratch
    budget = int(0.8 * limit)                # working-set target for tile sizing
    return budget, limit


# ---------------------------------------------------------------------------
# Kernels
# ---------------------------------------------------------------------------
def _linear_kernel(x_ref, w_ref, b_ref, o_ref):
    # x_ref: (tm, K)   w_ref: (K, tn)   b_ref: (1, tn) f32   o_ref: (tm, tn)
    x = x_ref[...]
    w = w_ref[...]
    if x.dtype != w.dtype:            # bf16 MXU path: cast only the matmul operand
        x = x.astype(w.dtype)
    acc = jnp.dot(x, w, preferred_element_type=jnp.float32)
    o_ref[...] = (acc + b_ref[...]).astype(o_ref.dtype)


def _linear_kernel_kacc(x_ref, w_ref, b_ref, o_ref, acc_ref):
    # Grid (M, N, K), K last ("arbitrary"); f32 accumulator resident in VMEM.
    k = pl.program_id(2)

    @pl.when(k == 0)
    def _():
        acc_ref[...] = jnp.zeros_like(acc_ref)

    x = x_ref[...]
    w = w_ref[...]
    if x.dtype != w.dtype:
        x = x.astype(w.dtype)
    acc_ref[...] += jnp.dot(x, w, preferred_element_type=jnp.float32)

    @pl.when(k == pl.num_programs(2) - 1)
    def _():
        o_ref[...] = (acc_ref[...] + b_ref[...]).astype(o_ref.dtype)


# ---------------------------------------------------------------------------
# Tile selection
# ---------------------------------------------------------------------------
def _select_tiles(m, dim_in, dout_p, xb, wb, ob, budget):
    """Return (tm, tn, tk, k_tiled).  tk == dim_in when k_tiled is False."""
    m_rnd = _round_up(max(m, 1), _SUBLANE)
    tm_cands = sorted(
        {min(c, m_rnd) for c in (8192, 4096, 2048, 1024, 512, 256, 128, 64, 32, 16, 8)},
        reverse=True)
    tn_cands = sorted({min(c, dout_p) for c in (2048, 1024, 512, 256, 128)}, reverse=True)

    def fits(tm, tn, tk, acc):
        # 2x for double-buffered x / w / bias / out tiles (+ f32 accumulator).
        per_step = tm * tk * xb + tk * tn * wb + tn * 4 + tm * tn * ob
        return 2 * per_step + (tm * tn * 4 if acc else 0) <= budget

    def best_for(tk, acc):
        best = None
        for tn in tn_cands:
            for tm in tm_cands:
                if fits(tm, tn, tk, acc):
                    key = (tm * tn, tm)
                    if best is None or key > best[0]:
                        best = (key, tm, tn)
        return best

    best_nok = best_for(dim_in, acc=False)
    target_tm, target_tn = min(512, m_rnd), min(256, dout_p)
    if best_nok is not None and best_nok[1] >= target_tm and best_nok[2] >= target_tn:
        return best_nok[1], best_nok[2], dim_in, False

    # K tiling: only clean (no padding) when dim_in splits into 128-aligned pieces;
    # a partial K block would otherwise feed garbage into the accumulator.
    if dim_in % _LANE == 0 and dim_in > _LANE:
        tk = next((c for c in (2048, 1024, 512, 384, 256, 128) if dim_in % c == 0), _LANE)
        best_k = best_for(tk, acc=True)
        if best_k is not None and (best_nok is None or best_k[0] > best_nok[0]):
            return best_k[1], best_k[2], tk, True

    if best_nok is not None:
        return best_nok[1], best_nok[2], dim_in, False

    # Nothing fits without K tiling (huge, non-128-aligned dim_in): force K tiling;
    # the caller zero-pads x / w on K.  # TODO(synk): pre-pad such weights at init.
    tk = _LANE
    if dim_in % _LANE == 0:
        tk = next((c for c in (2048, 1024, 512, 384, 256, 128) if dim_in % c == 0), _LANE)
    best_k = best_for(tk, acc=True)
    if best_k is None:
        return _SUBLANE, _LANE, _LANE, True
    return best_k[1], best_k[2], tk, True


# ---------------------------------------------------------------------------
# Parameter prep (do ONCE at init, not per forward)
# ---------------------------------------------------------------------------
def prepare_induced_network_params(weight, bias, compute_dtype=None):
    """weight: (dim_out, dim_in) PyTorch nn.Linear layout; bias: (dim_out,).

    Returns (wt_p, b_p, dim_out):
      wt_p: (dim_in, dout_p)  transposed + zero-padded on N to a lane multiple
      b_p : (1, dout_p)       f32 bias, zero-padded on N
    Optionally cast the weight to compute_dtype (e.g. jnp.bfloat16) to use the
    bf16 MXU path; accumulation in the kernel stays f32.
    """
    dim_out, dim_in = weight.shape
    dout_p = _round_up(dim_out, _LANE)
    wt = jnp.swapaxes(weight, 0, 1)          # (dim_in, dim_out): canonical (1,0) contraction
    if compute_dtype is not None:
        wt = wt.astype(compute_dtype)
    if dout_p != dim_out:
        wt = jnp.pad(wt, ((0, 0), (0, dout_p - dim_out)))
    b = bias.astype(jnp.float32).reshape(1, dim_out)
    if dout_p != dim_out:
        b = jnp.pad(b, ((0, 0), (0, dout_p - dim_out)))
    return wt, b, dim_out


# ---------------------------------------------------------------------------
# Forward
# ---------------------------------------------------------------------------
def induced_network_forward(x, wt_p, b_p, dim_out, *, use_pallas=None, _tile_override=None):
    """y = x @ W.T + b over the last axis of x (x_mask=None => masked_fill is identity)."""
    *lead, dim_in = x.shape
    k_w, dout_p = wt_p.shape
    assert k_w == dim_in and dout_p % _LANE == 0 and dim_out <= dout_p

    m = int(math.prod(lead)) if lead else 1
    if m == 0:
        return jnp.zeros((*lead, dim_out), dtype=x.dtype)

    x2d = x.reshape(m, dim_in)

    # Small-problem fast path: fixed pallas_call overhead dominates tiny shapes.
    if use_pallas is None:
        use_pallas = (m * dim_in * dout_p) >= _FAST_PATH_MACS
    if not use_pallas:
        y = jnp.dot(x2d, wt_p, preferred_element_type=jnp.float32) + b_p
        y = y.astype(x.dtype)
        y = y[:, :dim_out] if dim_out != dout_p else y
        return y.reshape(*lead, dim_out)

    xb = x.dtype.itemsize
    wb = wt_p.dtype.itemsize
    ob = xb
    budget, vmem_limit = _vmem_budget_and_limit()
    tm, tn, tk, k_tiled = _select_tiles(m, dim_in, dout_p, xb, wb, ob, budget)
    if _tile_override is not None:
        tm, tn, tk, k_tiled = _tile_override

    w_in = wt_p
    k_dim = dim_in
    if k_tiled and dim_in % tk != 0:
        # Rare fallback (huge, non-128-aligned dim_in): zero-pad K so partial K
        # blocks never feed garbage into the accumulator.
        # TODO(synk): pre-pad such weights at init to avoid this per-call copy.
        k_dim = _round_up(dim_in, tk)
        x2d = jnp.pad(x2d, ((0, 0), (0, k_dim - dim_in)))
        w_in = jnp.pad(wt_p, ((0, k_dim - dim_in), (0, 0)))

    grid_m = pl.cdiv(m, tm)
    grid_n = pl.cdiv(dout_p, tn)

    cost = pl.CostEstimate(
        flops=2 * m * dim_in * dout_p,
        transcendentals=0,
        bytes_accessed=(m * dim_in * xb + dim_in * dout_p * wb + dout_p * 4
                        + m * dout_p * ob),
    )

    if not k_tiled:
        out2d = pl.pallas_call(
            _linear_kernel,
            out_shape=jax.ShapeDtypeStruct((m, dout_p), x.dtype),
            grid_spec=pltpu.PrefetchScalarGridSpec(
                num_scalar_prefetch=0,
                grid=(grid_m, grid_n),
                in_specs=[
                    pl.BlockSpec((tm, k_dim), lambda i, j: (i, 0)),   # x tile (full K)
                    pl.BlockSpec((k_dim, tn), lambda i, j: (0, j)),   # weight streamed over N
                    pl.BlockSpec((1, tn), lambda i, j: (0, j)),       # bias
                ],
                out_specs=pl.BlockSpec((tm, tn), lambda i, j: (i, j)),
            ),
            compiler_params=pltpu.CompilerParams(
                dimension_semantics=("parallel", "parallel"),
                vmem_limit_bytes=vmem_limit,
            ),
            cost_estimate=cost,
        )(x2d, w_in, b_p)
    else:
        grid_k = k_dim // tk
        out2d = pl.pallas_call(
            _linear_kernel_kacc,
            out_shape=jax.ShapeDtypeStruct((m, dout_p), x.dtype),
            grid_spec=pltpu.PrefetchScalarGridSpec(
                num_scalar_prefetch=0,
                grid=(grid_m, grid_n, grid_k),
                in_specs=[
                    pl.BlockSpec((tm, tk), lambda i, j, k: (i, k)),
                    pl.BlockSpec((tk, tn), lambda i, j, k: (k, j)),
                    pl.BlockSpec((1, tn), lambda i, j, k: (0, j)),
                ],
                out_specs=pl.BlockSpec((tm, tn), lambda i, j, k: (i, j)),
                scratch_shapes=[pltpu.VMEM((tm, tn), jnp.float32)],
            ),
            compiler_params=pltpu.CompilerParams(
                dimension_semantics=("parallel", "parallel", "arbitrary"),
                vmem_limit_bytes=vmem_limit,
            ),
            cost_estimate=cost,
        )(x2d, w_in, b_p)

    out2d = out2d[:, :dim_out] if dim_out != dout_p else out2d
    return out2d.reshape(*lead, dim_out)


def induced_network_apply(x, weight, bias, *, compute_dtype=None, use_pallas=None):
    """Convenience wrapper taking raw PyTorch-layout params.
    In a real model call prepare_induced_network_params once at init and reuse."""
    wt_p, b_p, dim_out = prepare_induced_network_params(weight, bias, compute_dtype)
    return induced_network_forward(x, wt_p, b_p, dim_out, use_pallas=use_pallas)


if __name__ == "__main__":
    key = jax.random.PRNGKey(0)

    # --- Test 1: small shapes consistent with the module (x = (batch, seq, dim_in)).
    batch, seq, dim_in, dim_out = 2, 8, 32, 32
    kx, kw, kb, key = jax.random.split(key, 4)
    x = jax.random.normal(kx, (batch, seq, dim_in), dtype=jnp.float32)
    bound = 1.0 / (dim_in ** 0.5)  # nn.Linear default U(-1/sqrt(dim_in), 1/sqrt(dim_in))
    weight = jax.random.uniform(kw, (dim_out, dim_in), minval=-bound, maxval=bound,
                                dtype=jnp.float32)
    bias = jax.random.uniform(kb, (dim_out,), minval=-bound, maxval=bound,
                              dtype=jnp.float32)

    wt_p, b_p, d_out = prepare_induced_network_params(weight, bias)   # once, at "init"
    # Force the Pallas path (the default fast path would route tiny shapes to XLA).
    y = jax.block_until_ready(induced_network_forward(x, wt_p, b_p, d_out, use_pallas=True))
    y_ref = x @ weight.T + bias
    assert y.shape == (batch, seq, dim_out)
    assert jnp.allclose(y, y_ref, atol=1e-5, rtol=1e-5)

    # Fast-path routing gives the same answer.
    y_fast = jax.block_until_ready(induced_network_forward(x, wt_p, b_p, d_out))
    assert jnp.allclose(y_fast, y_ref, atol=1e-5, rtol=1e-5)

    # --- Test 2: exercise the tiled path (partial M blocks, N tiling, K accumulation).
    b2, s2, din2, dout2 = 3, 7, 256, 192
    kx2, kw2, kb2, key = jax.random.split(key, 4)
    x2 = jax.random.normal(kx2, (b2, s2, din2), dtype=jnp.float32)
    bound2 = 1.0 / (din2 ** 0.5)
    w2 = jax.random.uniform(kw2, (dout2, din2), minval=-bound2, maxval=bound2,
                            dtype=jnp.float32)
    bia2 = jax.random.uniform(kb2, (dout2,), minval=-bound2, maxval=bound2,
                              dtype=jnp.float32)
    wt2, bp2, do2 = prepare_induced_network_params(w2, bia2)
    y2 = jax.block_until_ready(
        induced_network_forward(x2, wt2, bp2, do2, use_pallas=True,
                                _tile_override=(8, 128, 128, True)))
    y2_ref = x2 @ w2.T + bia2
    assert y2.shape == (b2, s2, dout2)
    assert jnp.allclose(y2, y2_ref, atol=1e-5, rtol=1e-5)

    print("KERNEL_OK")
</pallas_src>

<mosaic_0001>
module attributes {stable_mosaic.version = 11 : i64} {
  func.func @_linear_kernel(%arg0: i32, %arg1: i32, %arg2: memref<16x32xf32, #tpu.memory_space<vmem>>, %arg3: memref<32x128xf32, #tpu.memory_space<vmem>>, %arg4: memref<1x128xf32, #tpu.memory_space<vmem>>, %arg5: memref<16x128xf32, #tpu.memory_space<vmem>>) attributes {dimension_semantics = [#tpu.dimension_semantics<parallel>, #tpu.dimension_semantics<parallel>], iteration_bounds = array<i64: 1, 1>, scalar_prefetch = 0 : i64, scratch_operands = 0 : i64, tpu.core_type = #tpu.core_type<tc>, window_params = [{transform_indices = @transform_0, window_bounds = array<i64: 16, 32>}, {transform_indices = @transform_1, window_bounds = array<i64: 32, 128>}, {transform_indices = @transform_2, window_bounds = array<i64: 1, 128>}, {transform_indices = @transform_3, window_bounds = array<i64: 16, 128>}]} {
    %c0 = arith.constant 0 : index
    %c0_0 = arith.constant 0 : index
    %0 = vector.load %arg2[%c0, %c0_0] : memref<16x32xf32, #tpu.memory_space<vmem>>, vector<16x32xf32>
    %c0_1 = arith.constant 0 : index
    %c0_2 = arith.constant 0 : index
    %1 = vector.load %arg3[%c0_1, %c0_2] : memref<32x128xf32, #tpu.memory_space<vmem>>, vector<32x128xf32>
    %cst = arith.constant dense<0.000000e+00> : vector<16x128xf32>
    %2 = tpu.matmul %0, %1, %cst {dimension_numbers = #tpu.dot_dimension_numbers<[1], [0], [0], [1], [0, 0, 1, 1], [], []>} : vector<16x32xf32>, vector<32x128xf32>, vector<16x128xf32> -> vector<16x128xf32>
    %c0_3 = arith.constant 0 : index
    %c0_4 = arith.constant 0 : index
    %3 = vector.load %arg4[%c0_3, %c0_4] : memref<1x128xf32, #tpu.memory_space<vmem>>, vector<1x128xf32>
    %4 = vector.broadcast %3 : vector<1x128xf32> to vector<16x128xf32>
    %5 = arith.addf %2, %4 : vector<16x128xf32>
    %c0_5 = arith.constant 0 : index
    %c0_6 = arith.constant 0 : index
    %6 = vector.load %arg5[%c0_5, %c0_6] : memref<16x128xf32, #tpu.memory_space<vmem>>, vector<16x128xf32>
    tpu.vector_store %arg5[%c0_5, %c0_6], %5 {strides = array<i32>} : memref<16x128xf32, #tpu.memory_space<vmem>>, vector<16x128xf32>,
    return
  }
  func.func @transform_0(%arg0: i32, %arg1: i32) -> (i32, i32) {
    %c0_i32 = arith.constant 0 : i32
    %c0_i32_0 = arith.constant 0 : i32
    return %arg0, %c0_i32 : i32, i32
  }
  func.func @transform_1(%arg0: i32, %arg1: i32) -> (i32, i32) {
    %c0_i32 = arith.constant 0 : i32
    %c0_i32_0 = arith.constant 0 : i32
    return %c0_i32, %arg1 : i32, i32
  }
  func.func @transform_2(%arg0: i32, %arg1: i32) -> (i32, i32) {
    %c0_i32 = arith.constant 0 : i32
    %c0_i32_0 = arith.constant 0 : i32
    return %c0_i32, %arg1 : i32, i32
  }
  func.func @transform_3(%arg0: i32, %arg1: i32) -> (i32, i32) {
    %c0_i32 = arith.constant 0 : i32
    return %arg0, %arg1 : i32, i32
  }
}

</mosaic_0001>

<bundles_post_ra>
// kernel: tpu_custom_call.1
= control target key start
LH: loop header
LB: loop body
LE: loop exit
PB: predicated region body
PF: predicated region fallthrough
CT: control target
= control target key end

     0   :  { %8 = vsyncpa [#allocation3], 0  ;;  %s336_s0 = inlined_call_operand.hbm [shape: f32[16,32], index: 0, kind: input, shape index: {}]   ;;  %s337_s1 = inlined_call_operand.hbm [shape: f32[32,128], index: 1, kind: input, shape index: {}]   ;;  %s338_s2 = inlined_call_operand.vmem [shape: f32[1,128], index: 2, kind: input, shape index: {}]   ;;  %s339_s3 = inlined_call_operand.hbm [shape: f32[16,128], index: 3, kind: output, shape index: {}]  }
   0x1   :  { %9 = vsyncpa [#allocation6], 0 }
   0x2   :  { %10 = vsyncpa [#allocation4], 0  ;;  %s263_s12 = smov [#allocation2]   ;;  %s191_s16 = scalar_lea.hbm %s336_s0, 256 }
   0x3   :  { %s16_s13 = sshll.u32 %s263_s12, 4  ;;  %p192_p0 = scmp.ne.s32.totalorder %s336_s0, %s191_s16  ;;  %s17_s13 = int_to_ptr.vmem [resolvable:$true] %s16_s13 }
   0x4   :  { %p195_p1 = scmp.lt.u32.totalorder %s191_s16, %s336_s0 }
   0x6   :  { %p197_p2 = pnand %p195_p1, %p192_p0 }
   0x8   :  { %200 = shalt.err (!%p197_p2)
}
   0x9   :  { %s201_s21 = scalar_lea.vmem %s17_s13, 256  ;;  %p206_p4 = scmp.lt.s32.totalorder %s17_s13, %s17_s13 }
   0xa   :  { %p202_p3 = scmp.ne.s32.totalorder %s17_s13, %s201_s21  ;;  %p207_p5 = scmp.lt.s32.totalorder %s201_s21, %s201_s21 }
   0xc   :  { %p208_p6 = por %p207_p5, %p206_p4 }
   0xe   :  { %p209_p7 = pnand %p208_p6, %p202_p3 }
  0x10   :  { %212 = shalt.err (!%p209_p7)
}
  0x11   :  { %s264_s22 = smov 128   ;;  %s265_s23 = smov 8  }
  0x12   :  { %22 = dma.hbm_to_vmem [thread:$0]  %s336_s0, 256, %s17_s13, [#allocation3], %s264_s22, %s264_s22, %s265_s23  }
  0x13   :  { %s266_s26 = smov [#allocation5]   ;;  %s213_s30 = scalar_lea.hbm %s337_s1, 512 }
  0x14   :  { %s28_s27 = sshll.u32 %s266_s26, 4  ;;  %p214_p8 = scmp.ne.s32.totalorder %s337_s1, %s213_s30  ;;  %s29_s27 = int_to_ptr.vmem [resolvable:$true] %s28_s27 }
  0x15   :  { %p217_p9 = scmp.lt.u32.totalorder %s213_s30, %s337_s1 }
  0x17   :  { %p219_p10 = pnand %p217_p9, %p214_p8 }
  0x19   :  { %222 = shalt.err (!%p219_p10)
}
  0x1a   :  { %s223_s8 = scalar_lea.vmem %s29_s27, 512  ;;  %p228_p12 = scmp.lt.s32.totalorder %s29_s27, %s29_s27 }
  0x1b   :  { %p224_p11 = scmp.ne.s32.totalorder %s29_s27, %s223_s8  ;;  %p229_p13 = scmp.lt.s32.totalorder %s223_s8, %s223_s8 }
  0x1d   :  { %p230_p0 = por %p229_p13, %p228_p12 }
  0x1f   :  { %p231_p1 = pnand %p230_p0, %p224_p11 }
  0x21   :  { %234 = shalt.err (!%p231_p1)
}
  0x22   :  { %34 = dma.hbm_to_vmem [thread:$0]  %s337_s1, 512, %s29_s27, [#allocation6], %s264_s22, %s264_s22, %s265_s23  }
  0x23   :  { %257 = dma.done.wait [#allocation3], 256  }
  0x24   :  { %258 = vsyncadd [#allocation3], 4294967040 }
  0x25   :  { %259 = dma.done.wait [#allocation6], 512  }
  0x26   :  { %260 = vsyncadd [#allocation6], 4294966784  ;;  %vm56_vm0 = vcmask 261120   ;;  %v45_v0 = vld [vmem:[#allocation5] sm:$0xff]  ;;  %v46_v1 = vld [vmem:[#allocation5 + $0x8] sm:$0xff]  ;;  %s267_s11 = smov [#allocation7]  }
  0x27   :  { %v47_v2 = vld [vmem:[#allocation5 + $0x10] sm:$0xff]  ;;  %v178_v3 = vpack.c.bf16 %v46_v1, %v45_v0  ;;  %v48_v4 = vld [vmem:[#allocation5 + $0x18] sm:$0xff]  ;;  %s145_s12 = sshll.u32 %s267_s11, 4  ;;  %s146_s12 = int_to_ptr.vmem [resolvable:$true] %s145_s12 }
  0x28   :  { %v43_v5 = vld [vmem:[#allocation2] sm:$0xff]  ;;  %v182_v6 = vpack.c.bf16 %v48_v4, %v47_v2  ;;  %v44_v7 = vld [vmem:[#allocation2 + $0x8] sm:$0xff]  ;;  %s235_s13 = scalar_lea.vmem %s146_s12, 256  ;;  %p240_p3 = scmp.lt.s32.totalorder %s146_s12, %s146_s12 }
  0x29   :  { %175 = vmatprep.mubr.msk.f32.mxu0 %vm56_vm0, %v43_v5  ;;  %179 = vmatprep.subr.bf16.mxu0 %v178_v3  ;;  %v158_v8 = vld [vmem:[%s338_s2] ss:$0 sm:$0xff]  ;;  %p236_p2 = scmp.ne.s32.totalorder %s146_s12, %s235_s13  ;;  %p241_p4 = scmp.lt.s32.totalorder %s235_s13, %s235_s13 }
  0x2a   :  { %181 = vmatpush3.bf16.msra.mxu0 %v178_v3 }
  0x2b   :  { %183 = vmatprep.subr.bf16.mxu0 %v182_v6  ;;  %p242_p5 = por %p241_p4, %p240_p3 }
  0x2d   :  { %p243_p6 = pnand %p242_p5, %p236_p2 }
  0x2e   :  { %185 = vmatpush3.bf16.msra.mxu0 %v182_v6 }
  0x31   :  { %176 = vmatmul.mubr.msk.f32.vlgmr.msra.gmra.mrb[0].mxu0 %vm56_vm0, %v44_v7 }
 0x104   :  { %v177_v9 = vpop.f32.mrb[0].mxu0 }
 0x105   :  { %v135_v10 = vadd.f32 %v177_v9, %v158_v8  ;;  %v129_v11 = vpop.f32.mrb[1].mxu0 }
 0x106   :  { %v130_v12 = vadd.f32 %v158_v8, %v129_v11 }
 0x107   :  { %139 = vst [vmem:[#allocation7 + $0x8] sm:$0xff] %v135_v10 }
 0x108   :  { %138 = vst [vmem:[#allocation7] sm:$0xff] %v130_v12 }
 0x109   :  { %246 = shalt.err (!%p243_p6)
}
 0x10a   :  { %s247_s2 = scalar_lea.hbm %s339_s3, 256 }
 0x10b   :  { %p248_p7 = scmp.ne.s32.totalorder %s339_s3, %s247_s2  ;;  %p251_p8 = scmp.lt.u32.totalorder %s247_s2, %s339_s3 }
 0x10d   :  { %p253_p9 = pnand %p251_p8, %p248_p7 }
 0x10f   :  { %256 = shalt.err (!%p253_p9)
}
 0x110   :  { %151 = dma.vmem_to_hbm [thread:$0]  %s146_s12, 256, %s339_s3, [#allocation4], %s264_s22, %s264_s22, %s265_s23  }
 0x111   :  { %261 = dma.done.wait [#allocation4], 256  }
 0x112   :  { %262 = vsyncadd [#allocation4], 4294967040 }
 0x113   :  { %155 = vsyncpa [#allocation3], 1 }
 0x114   :  { %156 = vsyncpa [#allocation6], 1 }
 0x115   :  { %157 = vsyncpa [#allocation4], 1 }

</bundles_post_ra>
